<compile_context>
chip_gen: v6e
topology: v6e:2x2x1
jax: 0.10.0
libtpu: 0.0.40
codegen_flags: <defaults>
</compile_context>

<pallas_src>
import jax
import jax.numpy as jnp
from jax.experimental import pallas as pl
from jax.experimental.pallas import tpu as pltpu

EPS = 1e-5
LANE = 128
TM_DEFAULT = 256  # rows (N*Ho*Wo) per tile; multiple of 8


def _round_up(x, m):
    return (x + m - 1) // m * m


# ---------------- Pass 1: conv matmul + per-tile partial BN stats ----------------
def _matmul_stats_kernel(p_ref, w_ref, y_ref, st_ref):
    # p_ref:  (TM, Kp)    im2col patch tile (zero-padded rows / K columns)
    # w_ref:  (Kp, Cp)    reshaped conv weight (zero-padded)
    # y_ref:  (TM, Cp)    conv output tile
    # st_ref: (1, 8, Cp)  per-tile partial stats: sublane 0 = sum, sublane 1 = sumsq
    y = jnp.dot(p_ref[...], w_ref[...], preferred_element_type=jnp.float32)
    y_ref[...] = y
    s = jnp.sum(y, axis=0, keepdims=True)        # (1, Cp)  padded rows add exactly 0
    sq = jnp.sum(y * y, axis=0, keepdims=True)   # (1, Cp)
    rows = jax.lax.broadcasted_iota(jnp.int32, (8, y.shape[1]), 0)
    st_ref[...] = jnp.where(rows == 0, s, jnp.where(rows == 1, sq, 0.0))[None]


# ---------------- Pass 2: fused per-channel scale/shift + ReLU ----------------
def _scale_shift_relu_kernel(y_ref, sc_ref, sh_ref, o_ref):
    # y_ref: (TM, Cp), sc_ref/sh_ref: (1, Cp), o_ref: (TM, Cp)
    o_ref[...] = jnp.maximum(y_ref[...] * sc_ref[...] + sh_ref[...], 0.0)


# ---------------- JAX glue ----------------
def _im2col_3x3_valid_nhwc(x_nhwc):
    # x: (N, H, W, C) -> patches (N*Ho*Wo, 9*C), K ordering = (ki, kj, cin)
    N, H, W, C = x_nhwc.shape
    Ho, Wo = H - 2, W - 2
    cols = [x_nhwc[:, ki:ki + Ho, kj:kj + Wo, :]
            for ki in range(3) for kj in range(3)]          # 9 x (N,Ho,Wo,C)
    p = jnp.stack(cols, axis=3)                             # (N, Ho, Wo, 9, C)
    return p.reshape(N * Ho * Wo, 9 * C), (N, Ho, Wo)


def conv_bn_relu_nhwc(x_nhwc, w, gamma, beta, *, tm=TM_DEFAULT,
                      compute_dtype=jnp.float32):
    """One Conv2d(k=3, pad=0) + BatchNorm2d(training stats) + ReLU block.

    x_nhwc: (N, H, W, Cin);  w: (Cout, Cin, 3, 3) in PyTorch OIHW order.
    The Conv2d bias is omitted: train-mode BN subtracts the batch mean, which
    cancels any per-channel bias exactly.
    Returns (N, Ho, Wo, Cout) float32.
    """
    Cout, Cin = w.shape[0], w.shape[1]
    p, (N, Ho, Wo) = _im2col_3x3_valid_nhwc(x_nhwc)
    M, K = p.shape

    # Weight rows ordered (ki, kj, cin) to match the NHWC im2col K ordering.
    wm = w.transpose(2, 3, 1, 0).reshape(K, Cout)

    Kp = _round_up(K, LANE)          # lane-dense / MXU-friendly contraction dim
    Cp = _round_up(Cout, LANE)       # lane-dense output channels (unmasked vst)
    Mp = _round_up(M, tm)
    n_tiles = Mp // tm

    p_pad = jnp.zeros((Mp, Kp), compute_dtype).at[:M, :K].set(p.astype(compute_dtype))
    w_pad = jnp.zeros((Kp, Cp), compute_dtype).at[:K, :Cout].set(wm.astype(compute_dtype))

    # ---- pass 1: tiled matmul + per-tile partial stats (parallel over M tiles)
    y_pad, stats = pl.pallas_call(
        _matmul_stats_kernel,
        out_shape=(jax.ShapeDtypeStruct((Mp, Cp), jnp.float32),
                   jax.ShapeDtypeStruct((n_tiles, 8, Cp), jnp.float32)),
        grid=(n_tiles,),
        in_specs=[
            pl.BlockSpec((tm, Kp), lambda i: (i, 0)),
            pl.BlockSpec((Kp, Cp), lambda i: (0, 0)),
        ],
        out_specs=(
            pl.BlockSpec((tm, Cp), lambda i: (i, 0)),
            pl.BlockSpec((1, 8, Cp), lambda i: (i, 0, 0)),
        ),
        compiler_params=pltpu.CompilerParams(
            dimension_semantics=("parallel",)),
    )(p_pad, w_pad)

    # ---- tiny per-channel reduction + BN affine fold (plain JAX, O(Cout))
    m_true = jnp.float32(M)
    ch_sum = jnp.sum(stats[:, 0, :Cout], axis=0)
    ch_sumsq = jnp.sum(stats[:, 1, :Cout], axis=0)
    mean = ch_sum / m_true
    var = ch_sumsq / m_true - mean * mean            # biased variance (BN train)
    scale = gamma.astype(jnp.float32) * jax.lax.rsqrt(var + EPS)
    shift = beta.astype(jnp.float32) - mean * scale
    scale_pad = jnp.zeros((1, Cp), jnp.float32).at[0, :Cout].set(scale)
    shift_pad = jnp.zeros((1, Cp), jnp.float32).at[0, :Cout].set(shift)

    # ---- pass 2: normalize (single FMA) + ReLU (parallel over M tiles)
    out_pad = pl.pallas_call(
        _scale_shift_relu_kernel,
        out_shape=jax.ShapeDtypeStruct((Mp, Cp), jnp.float32),
        grid=(n_tiles,),
        in_specs=[
            pl.BlockSpec((tm, Cp), lambda i: (i, 0)),
            pl.BlockSpec((1, Cp), lambda i: (0, 0)),
            pl.BlockSpec((1, Cp), lambda i: (0, 0)),
        ],
        out_specs=pl.BlockSpec((tm, Cp), lambda i: (i, 0)),
        compiler_params=pltpu.CompilerParams(
            dimension_semantics=("parallel",)),
    )(y_pad, scale_pad, shift_pad)

    return out_pad[:M, :Cout].reshape(N, Ho, Wo, Cout)


# TODO(synk): fuse both conv blocks into one pallas_call with spatial halo tiles
# so the intermediate activation never round-trips HBM (BN's global stats force
# a phase boundary, so it needs a two-phase grid inside the fused kernel).
def double_conv(x_nchw, params, *, compute_dtype=jnp.float32):
    """doubleConvFunc.forward.  params = ((w1,b1,g1,bt1), (w2,b2,g2,bt2)).

    Conv biases b1/b2 are accepted for interface parity but unused: they are
    exactly cancelled by the training-mode BatchNorm mean subtraction.
    """
    (w1, _b1, g1, bt1), (w2, _b2, g2, bt2) = params
    x = jnp.transpose(x_nchw, (0, 2, 3, 1))          # NCHW -> NHWC once
    h = conv_bn_relu_nhwc(x, w1, g1, bt1, compute_dtype=compute_dtype)
    h = conv_bn_relu_nhwc(h, w2, g2, bt2, compute_dtype=compute_dtype)
    return jnp.transpose(h, (0, 3, 1, 2))            # NHWC -> NCHW once


# -------------------- pure-JAX reference (faithful to PyTorch) --------------------
def _ref_block(x, w, b, g, bt):
    y = jax.lax.conv_general_dilated(
        x, w, window_strides=(1, 1), padding="VALID",
        dimension_numbers=("NCHW", "OIHW", "NCHW"))
    y = y + b[None, :, None, None]
    mean = y.mean(axis=(0, 2, 3), keepdims=True)
    var = ((y - mean) ** 2).mean(axis=(0, 2, 3), keepdims=True)
    yhat = (y - mean) / jnp.sqrt(var + EPS)
    return jnp.maximum(yhat * g[None, :, None, None] + bt[None, :, None, None], 0.0)


def _ref_double_conv(x, params):
    (w1, b1, g1, bt1), (w2, b2, g2, bt2) = params
    return _ref_block(_ref_block(x, w1, b1, g1, bt1), w2, b2, g2, bt2)


if __name__ == "__main__":
    key = jax.random.PRNGKey(0)
    kx, kw1, kb1, kw2, kb2 = jax.random.split(key, 5)

    N, Cin, H, W = 2, 4, 16, 16
    Cout = 8

    x = jax.random.normal(kx, (N, Cin, H, W), dtype=jnp.float32)

    # Conv weights/biases (PyTorch-style uniform init); BN gamma=1, beta=0.
    fan1 = Cin * 9
    w1 = jax.random.uniform(kw1, (Cout, Cin, 3, 3), jnp.float32,
                            -1.0 / fan1 ** 0.5, 1.0 / fan1 ** 0.5)
    b1 = jax.random.uniform(kb1, (Cout,), jnp.float32,
                            -1.0 / fan1 ** 0.5, 1.0 / fan1 ** 0.5)
    g1 = jnp.ones((Cout,), jnp.float32)
    bt1 = jnp.zeros((Cout,), jnp.float32)

    fan2 = Cout * 9
    w2 = jax.random.uniform(kw2, (Cout, Cout, 3, 3), jnp.float32,
                            -1.0 / fan2 ** 0.5, 1.0 / fan2 ** 0.5)
    b2 = jax.random.uniform(kb2, (Cout,), jnp.float32,
                            -1.0 / fan2 ** 0.5, 1.0 / fan2 ** 0.5)
    g2 = jnp.ones((Cout,), jnp.float32)
    bt2 = jnp.zeros((Cout,), jnp.float32)

    params = ((w1, b1, g1, bt1), (w2, b2, g2, bt2))

    fwd = jax.jit(double_conv)
    out = jax.block_until_ready(fwd(x, params))
    ref = jax.block_until_ready(_ref_double_conv(x, params))

    assert out.shape == (N, Cout, H - 4, W - 4), out.shape
    assert jnp.allclose(out, ref, atol=5e-4, rtol=5e-4), \
        float(jnp.abs(out - ref).max())

    print("KERNEL_OK")
</pallas_src>

<mosaic_0001>
module attributes {stable_mosaic.version = 11 : i64} {
  func.func @_matmul_stats_kernel(%arg0: i32, %arg1: memref<256x128xf32, #tpu.memory_space<vmem>>, %arg2: memref<128x128xf32, #tpu.memory_space<vmem>>, %arg3: memref<256x128xf32, #tpu.memory_space<vmem>>, %arg4: memref<1x8x128xf32, #tpu.memory_space<vmem>>) attributes {dimension_semantics = [#tpu.dimension_semantics<parallel>], iteration_bounds = array<i64: 2>, scalar_prefetch = 0 : i64, scratch_operands = 0 : i64, tpu.core_type = #tpu.core_type<tc>, window_params = [{transform_indices = @transform_0, window_bounds = array<i64: 256, 128>}, {pipeline_mode = #tpu.pipeline_mode<synchronous>, transform_indices = @transform_1, window_bounds = array<i64: 128, 128>}, {transform_indices = @transform_2, window_bounds = array<i64: 256, 128>}, {transform_indices = @transform_3, window_bounds = array<i64: 1, 8, 128>}]} {
    %c0 = arith.constant 0 : index
    %c0_0 = arith.constant 0 : index
    %0 = vector.load %arg1[%c0, %c0_0] : memref<256x128xf32, #tpu.memory_space<vmem>>, vector<256x128xf32>
    %c0_1 = arith.constant 0 : index
    %c0_2 = arith.constant 0 : index
    %1 = vector.load %arg2[%c0_1, %c0_2] : memref<128x128xf32, #tpu.memory_space<vmem>>, vector<128x128xf32>
    %cst = arith.constant dense<0.000000e+00> : vector<256x128xf32>
    %2 = tpu.matmul %0, %1, %cst {dimension_numbers = #tpu.dot_dimension_numbers<[1], [0], [0], [1], [0, 0, 1, 1], [], []>} : vector<256x128xf32>, vector<128x128xf32>, vector<256x128xf32> -> vector<256x128xf32>
    %c0_3 = arith.constant 0 : index
    %c0_4 = arith.constant 0 : index
    %3 = vector.load %arg3[%c0_3, %c0_4] : memref<256x128xf32, #tpu.memory_space<vmem>>, vector<256x128xf32>
    tpu.vector_store %arg3[%c0_3, %c0_4], %2 {strides = array<i32>} : memref<256x128xf32, #tpu.memory_space<vmem>>, vector<256x128xf32>,
    %cst_5 = arith.constant dense<0.000000e+00> : vector<128xf32>
    %4 = vector.multi_reduction <add>, %2, %cst_5 [0] : vector<256x128xf32> to vector<128xf32>
    %5 = vector.shape_cast %4 : vector<128xf32> to vector<1x128xf32>
    %6 = arith.mulf %2, %2 : vector<256x128xf32>
    %cst_6 = arith.constant dense<0.000000e+00> : vector<128xf32>
    %7 = vector.multi_reduction <add>, %6, %cst_6 [0] : vector<256x128xf32> to vector<128xf32>
    %8 = vector.shape_cast %7 : vector<128xf32> to vector<1x128xf32>
    %9 = tpu.iota {dimensions = array<i32: 0>} : vector<8x128xi32>
    %c0_i32 = arith.constant 0 : i32
    %10 = vector.broadcast %c0_i32 : i32 to vector<8x128xi32>
    %11 = arith.cmpi eq, %9, %10 : vector<8x128xi32>
    %c1_i32 = arith.constant 1 : i32
    %12 = vector.broadcast %c1_i32 : i32 to vector<8x128xi32>
    %13 = arith.cmpi eq, %9, %12 : vector<8x128xi32>
    %cst_7 = arith.constant 0.000000e+00 : f32
    %14 = vector.shape_cast %8 : vector<1x128xf32> to vector<1x128xf32>
    %15 = vector.broadcast %14 : vector<1x128xf32> to vector<8x128xf32>
    %16 = vector.broadcast %cst_7 : f32 to vector<8x128xf32>
    %17 = arith.select %13, %15, %16 : vector<8x128xi1>, vector<8x128xf32>
    %18 = vector.shape_cast %5 : vector<1x128xf32> to vector<1x128xf32>
    %19 = vector.broadcast %18 : vector<1x128xf32> to vector<8x128xf32>
    %20 = arith.select %11, %19, %17 : vector<8x128xi1>, vector<8x128xf32>
    %21 = vector.shape_cast %20 : vector<8x128xf32> to vector<1x8x128xf32>
    %c0_8 = arith.constant 0 : index
    %c0_9 = arith.constant 0 : index
    %c0_10 = arith.constant 0 : index
    %22 = vector.load %arg4[%c0_8, %c0_9, %c0_10] : memref<1x8x128xf32, #tpu.memory_space<vmem>>, vector<1x8x128xf32>
    tpu.vector_store %arg4[%c0_8, %c0_9, %c0_10], %21 {strides = array<i32>} : memref<1x8x128xf32, #tpu.memory_space<vmem>>, vector<1x8x128xf32>,
    return
  }
  func.func @transform_0(%arg0: i32) -> (i32, i32) {
    %c0_i32 = arith.constant 0 : i32
    %c0_i32_0 = arith.constant 0 : i32
    return %arg0, %c0_i32 : i32, i32
  }
  func.func @transform_1(%arg0: i32) -> (i32, i32) {
    %c0_i32 = arith.constant 0 : i32
    %c0_i32_0 = arith.constant 0 : i32
    %c0_i32_1 = arith.constant 0 : i32
    return %c0_i32, %c0_i32_0 : i32, i32
  }
  func.func @transform_2(%arg0: i32) -> (i32, i32) {
    %c0_i32 = arith.constant 0 : i32
    %c0_i32_0 = arith.constant 0 : i32
    return %arg0, %c0_i32 : i32, i32
  }
  func.func @transform_3(%arg0: i32) -> (i32, i32, i32) {
    %c0_i32 = arith.constant 0 : i32
    %c0_i32_0 = arith.constant 0 : i32
    %c0_i32_1 = arith.constant 0 : i32
    return %arg0, %c0_i32, %c0_i32_0 : i32, i32, i32
  }
}

module attributes {stable_mosaic.version = 11 : i64} {
  func.func @_scale_shift_relu_kernel(%arg0: i32, %arg1: memref<256x128xf32, #tpu.memory_space<vmem>>, %arg2: memref<1x128xf32, #tpu.memory_space<vmem>>, %arg3: memref<1x128xf32, #tpu.memory_space<vmem>>, %arg4: memref<256x128xf32, #tpu.memory_space<vmem>>) attributes {dimension_semantics = [#tpu.dimension_semantics<parallel>], iteration_bounds = array<i64: 2>, scalar_prefetch = 0 : i64, scratch_operands = 0 : i64, tpu.core_type = #tpu.core_type<tc>, window_params = [{transform_indices = @transform_0, window_bounds = array<i64: 256, 128>}, {pipeline_mode = #tpu.pipeline_mode<synchronous>, transform_indices = @transform_1, window_bounds = array<i64: 1, 128>}, {pipeline_mode = #tpu.pipeline_mode<synchronous>, transform_indices = @transform_2, window_bounds = array<i64: 1, 128>}, {transform_indices = @transform_3, window_bounds = array<i64: 256, 128>}]} {
    %c0 = arith.constant 0 : index
    %c0_0 = arith.constant 0 : index
    %0 = vector.load %arg1[%c0, %c0_0] : memref<256x128xf32, #tpu.memory_space<vmem>>, vector<256x128xf32>
    %c0_1 = arith.constant 0 : index
    %c0_2 = arith.constant 0 : index
    %1 = vector.load %arg2[%c0_1, %c0_2] : memref<1x128xf32, #tpu.memory_space<vmem>>, vector<1x128xf32>
    %2 = vector.broadcast %1 : vector<1x128xf32> to vector<256x128xf32>
    %3 = arith.mulf %0, %2 : vector<256x128xf32>
    %c0_3 = arith.constant 0 : index
    %c0_4 = arith.constant 0 : index
    %4 = vector.load %arg3[%c0_3, %c0_4] : memref<1x128xf32, #tpu.memory_space<vmem>>, vector<1x128xf32>
    %5 = vector.broadcast %4 : vector<1x128xf32> to vector<256x128xf32>
    %6 = arith.addf %3, %5 : vector<256x128xf32>
    %cst = arith.constant 0.000000e+00 : f32
    %7 = vector.broadcast %cst : f32 to vector<256x128xf32>
    %8 = arith.maximumf %6, %7 : vector<256x128xf32>
    %c0_5 = arith.constant 0 : index
    %c0_6 = arith.constant 0 : index
    %9 = vector.load %arg4[%c0_5, %c0_6] : memref<256x128xf32, #tpu.memory_space<vmem>>, vector<256x128xf32>
    tpu.vector_store %arg4[%c0_5, %c0_6], %8 {strides = array<i32>} : memref<256x128xf32, #tpu.memory_space<vmem>>, vector<256x128xf32>,
    return
  }
  func.func @transform_0(%arg0: i32) -> (i32, i32) {
    %c0_i32 = arith.constant 0 : i32
    %c0_i32_0 = arith.constant 0 : i32
    return %arg0, %c0_i32 : i32, i32
  }
  func.func @transform_1(%arg0: i32) -> (i32, i32) {
    %c0_i32 = arith.constant 0 : i32
    %c0_i32_0 = arith.constant 0 : i32
    %c0_i32_1 = arith.constant 0 : i32
    return %c0_i32, %c0_i32_0 : i32, i32
  }
  func.func @transform_2(%arg0: i32) -> (i32, i32) {
    %c0_i32 = arith.constant 0 : i32
    %c0_i32_0 = arith.constant 0 : i32
    %c0_i32_1 = arith.constant 0 : i32
    return %c0_i32, %c0_i32_0 : i32, i32
  }
  func.func @transform_3(%arg0: i32) -> (i32, i32) {
    %c0_i32 = arith.constant 0 : i32
    %c0_i32_0 = arith.constant 0 : i32
    return %arg0, %c0_i32 : i32, i32
  }
}

</mosaic_0001>

<bundles_post_ra>
// kernel: double_conv.5
= control target key start
LH: loop header
LB: loop body
LE: loop exit
PB: predicated region body
PF: predicated region fallthrough
CT: control target
= control target key end

     0   :  { %s453_s12 = smov 0   ;;  %s612_s0 = inlined_call_operand.vmem [shape: f32[512,128], index: 0, kind: input, shape index: {}]   ;;  %s613_s1 = inlined_call_operand.vmem [shape: f32[1,128], index: 1, kind: input, shape index: {}]   ;;  %s614_s2 = inlined_call_operand.vmem [shape: f32[1,128], index: 2, kind: input, shape index: {}]   ;;  %s615_s3 = inlined_call_operand.vmem [shape: f32[512,128], index: 3, kind: output, shape index: {}]  }
   0x1 LB: > { %s404_s13 = sadd.s32 4294967295, %s431_s12   ;;  %p408_p0 = scmp.ge.s32.totalorder %s431_s12, 1  ;;  %s431_s12 = sphi %s453_s12, %s13_s12  }
   0x2   : > { %p138_p1 = scmp.lt.s32.totalorder %s431_s12, 3 }
   0x4   : > { %p139_p2 = pnand %p408_p0, %p138_p1 }
   0x5   : > { %s409_s14 = sshll.u32 (!%p139_p2), %s404_s13, 5 }
   0x6   : > { %142 = sbr.rel (%p139_p2) target bundleno = 44 (0x2c), region = 32  ;;  %p163_p3 = scmp.lt.s32.totalorder (!%p139_p2), %s409_s14, 63 }
   0xb   : > { %s617_s14 = smov (!%p163_p3, %s409_s14), 63  ;;  %v464_v0 = vld [vmem:[%s613_s1] ss:$0 sm:$0xff] }
   0xc   : > { %s410_s15 = sshll.u32 %s617_s14, 3  ;;  %v474_v1 = vld [vmem:[%s614_s2] ss:$0 sm:$0xff] }
   0xd   : > { %s469_s20 = scalar_lea.vmem %s612_s0, %s410_s15  ;;  %s497_s25 = scalar_lea.vmem %s615_s3, %s410_s15 }
   0xe   : > { %v174_v2 = vld [vmem:[%s469_s20] sm:$0xff]  ;;  %v175_v3 = vld [vmem:[%s469_s20 + $0x8] sm:$0xff]  ;;  %v176_v4 = vld [vmem:[%s469_s20 + $0x10] sm:$0xff] }
   0xf   : > { %v213_v5 = vmul.f32 %v464_v0, %v174_v2  ;;  %v214_v6 = vmul.f32 %v464_v0, %v175_v3  ;;  %v215_v7 = vmul.f32 %v464_v0, %v176_v4  ;;  %v177_v8 = vld [vmem:[%s469_s20 + $0x18] sm:$0xff]  ;;  %v178_v9 = vld [vmem:[%s469_s20 + $0x20] sm:$0xff]  ;;  %v179_v10 = vld [vmem:[%s469_s20 + $0x28] sm:$0xff] }
  0x10   : > { %v216_v11 = vmul.f32 %v464_v0, %v177_v8  ;;  %v217_v12 = vmul.f32 %v464_v0, %v178_v9  ;;  %v218_v13 = vmul.f32 %v464_v0, %v179_v10  ;;  %v180_v14 = vld [vmem:[%s469_s20 + $0x30] sm:$0xff]  ;;  %v181_v15 = vld [vmem:[%s469_s20 + $0x38] sm:$0xff]  ;;  %v182_v24 = vld [vmem:[%s469_s20 + $0x40] sm:$0xff] }
  0x11   : > { %v252_v16 = vadd.f32 %v474_v1, %v213_v5  ;;  %v253_v17 = vadd.f32 %v474_v1, %v214_v6  ;;  %v254_v18 = vadd.f32 %v474_v1, %v215_v7  ;;  %v219_v19 = vmul.f32 %v464_v0, %v180_v14  ;;  %v183_v25 = vld [vmem:[%s469_s20 + $0x48] sm:$0xff]  ;;  %v184_v26 = vld [vmem:[%s469_s20 + $0x50] sm:$0xff]  ;;  %v185_v31 = vld [vmem:[%s469_s20 + $0x58] sm:$0xff] }
  0x12   : > { %v255_v20 = vadd.f32 %v474_v1, %v216_v11  ;;  %v256_v21 = vadd.f32 %v474_v1, %v217_v12  ;;  %v257_v22 = vadd.f32 %v474_v1, %v218_v13  ;;  %v220_v23 = vmul.f32 %v464_v0, %v181_v15  ;;  %v186_v32 = vld [vmem:[%s469_s20 + $0x60] sm:$0xff]  ;;  %v187_v33 = vld [vmem:[%s469_s20 + $0x68] sm:$0xff]  ;;  %v188_v38 = vld [vmem:[%s469_s20 + $0x70] sm:$0xff] }
  0x13   : > { %v284_v27 = vmax.f32 %v252_v16, 0.0  ;;  %v285_v28 = vmax.f32 %v253_v17, 0.0  ;;  %v286_v29 = vmax.f32 %v254_v18, 0.0  ;;  %v258_v30 = vadd.f32 %v474_v1, %v219_v19  ;;  %v189_v43 = vld [vmem:[%s469_s20 + $0x78] sm:$0xff]  ;;  %v190_v56 = vld [vmem:[%s469_s20 + $0x80] sm:$0xff]  ;;  %v191_v57 = vld [vmem:[%s469_s20 + $0x88] sm:$0xff] }
  0x14   : > { %v287_v34 = vmax.f32 %v255_v20, 0.0  ;;  %v288_v35 = vmax.f32 %v256_v21, 0.0  ;;  %v289_v36 = vmax.f32 %v257_v22, 0.0  ;;  %v259_v37 = vadd.f32 %v474_v1, %v220_v23  ;;  %v192_v58 = vld [vmem:[%s469_s20 + $0x90] sm:$0xff]  ;;  %v193_v63 = vld [vmem:[%s469_s20 + $0x98] sm:$0xff]  ;;  %v194_v2 = vld [vmem:[%s469_s20 + $0xa0] sm:$0xff] }
  0x15   : > { %316 = vst [vmem:[%s497_s25] sm:$0xff] %v284_v27  ;;  %317 = vst [vmem:[%s497_s25 + $0x8] sm:$0xff] %v285_v28  ;;  %v290_v39 = vmax.f32 %v258_v30, 0.0  ;;  %v221_v40 = vmul.f32 %v464_v0, %v182_v24  ;;  %v222_v41 = vmul.f32 %v464_v0, %v183_v25  ;;  %v223_v42 = vmul.f32 %v464_v0, %v184_v26  ;;  %v195_v3 = vld [vmem:[%s469_s20 + $0xa8] sm:$0xff]  ;;  %v196_v8 = vld [vmem:[%s469_s20 + $0xb0] sm:$0xff] }
  0x16   : > { %318 = vst [vmem:[%s497_s25 + $0x10] sm:$0xff] %v286_v29  ;;  %319 = vst [vmem:[%s497_s25 + $0x18] sm:$0xff] %v287_v34  ;;  %v291_v44 = vmax.f32 %v259_v37, 0.0  ;;  %v224_v45 = vmul.f32 %v464_v0, %v185_v31  ;;  %v225_v46 = vmul.f32 %v464_v0, %v186_v32  ;;  %v226_v47 = vmul.f32 %v464_v0, %v187_v33  ;;  %v197_v13 = vld [vmem:[%s469_s20 + $0xb8] sm:$0xff]  ;;  %v198_v26 = vld [vmem:[%s469_s20 + $0xc0] sm:$0xff] }
  0x17   : > { %320 = vst [vmem:[%s497_s25 + $0x20] sm:$0xff] %v288_v35  ;;  %321 = vst [vmem:[%s497_s25 + $0x28] sm:$0xff] %v289_v36  ;;  %v260_v48 = vadd.f32 %v474_v1, %v221_v40  ;;  %v261_v49 = vadd.f32 %v474_v1, %v222_v41  ;;  %v262_v50 = vadd.f32 %v474_v1, %v223_v42  ;;  %v199_v27 = vld [vmem:[%s469_s20 + $0xc8] sm:$0xff]  ;;  %v200_v28 = vld [vmem:[%s469_s20 + $0xd0] sm:$0xff] }
  0x18   : > { %322 = vst [vmem:[%s497_s25 + $0x30] sm:$0xff] %v290_v39  ;;  %v227_v51 = vmul.f32 %v464_v0, %v188_v38  ;;  %323 = vst [vmem:[%s497_s25 + $0x38] sm:$0xff] %v291_v44  ;;  %v263_v52 = vadd.f32 %v474_v1, %v224_v45  ;;  %v264_v53 = vadd.f32 %v474_v1, %v225_v46  ;;  %v201_v33 = vld [vmem:[%s469_s20 + $0xd8] sm:$0xff]  ;;  %v202_v34 = vld [vmem:[%s469_s20 + $0xe0] sm:$0xff] }
  0x19   : > { %v265_v54 = vadd.f32 %v474_v1, %v226_v47  ;;  %v228_v55 = vmul.f32 %v464_v0, %v189_v43  ;;  %v292_v59 = vmax.f32 %v260_v48, 0.0  ;;  %v293_v60 = vmax.f32 %v261_v49, 0.0  ;;  %v203_v35 = vld [vmem:[%s469_s20 + $0xe8] sm:$0xff]  ;;  %v204_v40 = vld [vmem:[%s469_s20 + $0xf0] sm:$0xff]  ;;  %v205_v45 = vld [vmem:[%s469_s20 + $0xf8] sm:$0xff] }
  0x1a   : > { %v294_v61 = vmax.f32 %v262_v50, 0.0  ;;  %v266_v62 = vadd.f32 %v474_v1, %v227_v51  ;;  %v295_v4 = vmax.f32 %v263_v52, 0.0  ;;  %v296_v5 = vmax.f32 %v264_v53, 0.0 }
  0x1b   : > { %v297_v6 = vmax.f32 %v265_v54, 0.0  ;;  %v267_v7 = vadd.f32 %v474_v1, %v228_v55  ;;  %324 = vst [vmem:[%s497_s25 + $0x40] sm:$0xff] %v292_v59  ;;  %325 = vst [vmem:[%s497_s25 + $0x48] sm:$0xff] %v293_v60  ;;  %v229_v10 = vmul.f32 %v464_v0, %v190_v56  ;;  %v230_v11 = vmul.f32 %v464_v0, %v191_v57 }
  0x1c   : > { %326 = vst [vmem:[%s497_s25 + $0x50] sm:$0xff] %v294_v61  ;;  %v298_v9 = vmax.f32 %v266_v62, 0.0  ;;  %v231_v12 = vmul.f32 %v464_v0, %v192_v58  ;;  %327 = vst [vmem:[%s497_s25 + $0x58] sm:$0xff] %v295_v4  ;;  %v232_v15 = vmul.f32 %v464_v0, %v193_v63  ;;  %v233_v16 = vmul.f32 %v464_v0, %v194_v2 }
  0x1d   : > { %328 = vst [vmem:[%s497_s25 + $0x60] sm:$0xff] %v296_v5  ;;  %329 = vst [vmem:[%s497_s25 + $0x68] sm:$0xff] %v297_v6  ;;  %v299_v14 = vmax.f32 %v267_v7, 0.0  ;;  %v234_v17 = vmul.f32 %v464_v0, %v195_v3  ;;  %v268_v18 = vadd.f32 %v474_v1, %v229_v10  ;;  %v269_v19 = vadd.f32 %v474_v1, %v230_v11 }
  0x1e   : > { %330 = vst [vmem:[%s497_s25 + $0x70] sm:$0xff] %v298_v9  ;;  %v270_v20 = vadd.f32 %v474_v1, %v231_v12  ;;  %v235_v21 = vmul.f32 %v464_v0, %v196_v8  ;;  %v271_v22 = vadd.f32 %v474_v1, %v232_v15  ;;  %v272_v23 = vadd.f32 %v474_v1, %v233_v16 }
  0x1f   : > { %331 = vst [vmem:[%s497_s25 + $0x78] sm:$0xff] %v299_v14  ;;  %v273_v24 = vadd.f32 %v474_v1, %v234_v17  ;;  %v236_v25 = vmul.f32 %v464_v0, %v197_v13  ;;  %v300_v29 = vmax.f32 %v268_v18, 0.0  ;;  %v301_v30 = vmax.f32 %v269_v19, 0.0 }
  0x20   : > { %v302_v31 = vmax.f32 %v270_v20, 0.0  ;;  %v274_v32 = vadd.f32 %v474_v1, %v235_v21  ;;  %v303_v36 = vmax.f32 %v271_v22, 0.0  ;;  %v304_v37 = vmax.f32 %v272_v23, 0.0 }
  0x21   : > { %v305_v38 = vmax.f32 %v273_v24, 0.0  ;;  %v275_v39 = vadd.f32 %v474_v1, %v236_v25  ;;  %332 = vst [vmem:[%s497_s25 + $0x80] sm:$0xff] %v300_v29  ;;  %333 = vst [vmem:[%s497_s25 + $0x88] sm:$0xff] %v301_v30  ;;  %v237_v42 = vmul.f32 %v464_v0, %v198_v26  ;;  %v238_v43 = vmul.f32 %v464_v0, %v199_v27 }
  0x22   : > { %334 = vst [vmem:[%s497_s25 + $0x90] sm:$0xff] %v302_v31  ;;  %v306_v41 = vmax.f32 %v274_v32, 0.0  ;;  %v239_v44 = vmul.f32 %v464_v0, %v200_v28  ;;  %335 = vst [vmem:[%s497_s25 + $0x98] sm:$0xff] %v303_v36  ;;  %v240_v47 = vmul.f32 %v464_v0, %v201_v33  ;;  %v241_v48 = vmul.f32 %v464_v0, %v202_v34 }
  0x23   : > { %336 = vst [vmem:[%s497_s25 + $0xa0] sm:$0xff] %v304_v37  ;;  %337 = vst [vmem:[%s497_s25 + $0xa8] sm:$0xff] %v305_v38  ;;  %v307_v46 = vmax.f32 %v275_v39, 0.0  ;;  %v242_v49 = vmul.f32 %v464_v0, %v203_v35  ;;  %v276_v50 = vadd.f32 %v474_v1, %v237_v42  ;;  %v277_v51 = vadd.f32 %v474_v1, %v238_v43 }
  0x24   : > { %338 = vst [vmem:[%s497_s25 + $0xb0] sm:$0xff] %v306_v41  ;;  %v278_v52 = vadd.f32 %v474_v1, %v239_v44  ;;  %v243_v53 = vmul.f32 %v464_v0, %v204_v40  ;;  %v279_v54 = vadd.f32 %v474_v1, %v240_v47  ;;  %v280_v55 = vadd.f32 %v474_v1, %v241_v48 }
  0x25   : > { %339 = vst [vmem:[%s497_s25 + $0xb8] sm:$0xff] %v307_v46  ;;  %v281_v56 = vadd.f32 %v474_v1, %v242_v49  ;;  %v244_v57 = vmul.f32 %v464_v0, %v205_v45  ;;  %v308_v58 = vmax.f32 %v276_v50, 0.0  ;;  %v309_v59 = vmax.f32 %v277_v51, 0.0 }
  0x26   : > { %v310_v60 = vmax.f32 %v278_v52, 0.0  ;;  %v282_v61 = vadd.f32 %v474_v1, %v243_v53  ;;  %v311_v62 = vmax.f32 %v279_v54, 0.0  ;;  %v312_v63 = vmax.f32 %v280_v55, 0.0 }
  0x27   : > { %v313_v2 = vmax.f32 %v281_v56, 0.0  ;;  %v283_v3 = vadd.f32 %v474_v1, %v244_v57  ;;  %340 = vst [vmem:[%s497_s25 + $0xc0] sm:$0xff] %v308_v58  ;;  %341 = vst [vmem:[%s497_s25 + $0xc8] sm:$0xff] %v309_v59 }
  0x28   : > { %342 = vst [vmem:[%s497_s25 + $0xd0] sm:$0xff] %v310_v60  ;;  %v314_v4 = vmax.f32 %v282_v61, 0.0  ;;  %343 = vst [vmem:[%s497_s25 + $0xd8] sm:$0xff] %v311_v62 }
  0x29   : > { %344 = vst [vmem:[%s497_s25 + $0xe0] sm:$0xff] %v312_v63  ;;  %345 = vst [vmem:[%s497_s25 + $0xe8] sm:$0xff] %v313_v2  ;;  %v315_v0 = vmax.f32 %v283_v3, 0.0 }
  0x2a   : > { %346 = vst [vmem:[%s497_s25 + $0xf0] sm:$0xff] %v314_v4 }
  0x2b   : > { %347 = vst [vmem:[%s497_s25 + $0xf8] sm:$0xff] %v315_v0 }
  0x2c PF: > { %s13_s12 = sadd.s32 1, %s431_s12  }
  0x2d   : > { %p10_p4 = scmp.ge.s32.totalorder %s13_s12, 4  }
  0x2f   :  { %12 = sbr.rel (!%p10_p4) target bundleno = 1 (0x1), region = 62 }

// kernel: double_conv.4
= control target key start
LH: loop header
LB: loop body
LE: loop exit
PB: predicated region body
PF: predicated region fallthrough
CT: control target
= control target key end

     0   :  { %s898_s12 = smov 0   ;;  %s1118_s0 = inlined_call_operand.vmem [shape: f32[512,128], index: 0, kind: input, shape index: {}]   ;;  %s1119_s1 = inlined_call_operand.vmem [shape: f32[128,128], index: 1, kind: input, shape index: {}]   ;;  %s1120_s2 = inlined_call_operand.vmem [shape: f32[512,128], index: 2, kind: output, shape index: {0}]   ;;  %s1121_s3 = inlined_call_operand.vmem [shape: f32[2,8,128], index: 3, kind: output, shape index: {1}]  }
   0x1 LB: > { %s904_s13 = sadd.s32 4294967295, %s876_s12   ;;  %p694_p0 = scmp.ge.s32.totalorder %s876_s12, 1  ;;  %s876_s12 = sphi %s898_s12, %s14_s12  }
   0x2   : > { %p141_p1 = scmp.lt.s32.totalorder %s876_s12, 3 }
   0x4   : > { %p142_p2 = pnand %p694_p0, %p141_p1 }
   0x5   : > { %s695_s18 = sshll.u32 (!%p142_p2), %s904_s13, 5  ;;  %p181_p4 = scmp.lt.s32.totalorder (!%p142_p2), %s904_s13, 1 }
   0x6   : > { %145 = sbr.rel (%p142_p2) target bundleno = 320 (0x140), region = 28  ;;  %p170_p3 = scmp.lt.s32.totalorder (!%p142_p2), %s695_s18, 63 }
   0xb   : > { %v232_v0 = vld [vmem:[%s1119_s1 + $0x78] sm:$0xff]  ;;  %v231_v1 = vld [vmem:[%s1119_s1 + $0x70] sm:$0xff]  ;;  %v230_v2 = vld [vmem:[%s1119_s1 + $0x68] sm:$0xff]  ;;  %s1123_s18 = smov (!%p170_p3, %s695_s18), 63  ;;  %s1125_s13 = smov (!%p181_p4, %s904_s13), 1 }
   0xc   : > { %750 = vmatprep.subr.mxu0 %v232_v0  ;;  %830 = vmatprep.subr.mxu1 %v232_v0  ;;  %v229_v3 = vld [vmem:[%s1119_s1 + $0x60] sm:$0xff]  ;;  %s696_s23 = sshll.u32 %s1123_s18, 3  ;;  %v228_v4 = vld [vmem:[%s1119_s1 + $0x58] sm:$0xff]  ;;  %v227_v6 = vld [vmem:[%s1119_s1 + $0x50] sm:$0xff]  ;;  %s699_s18 = sshll.u32 %s1125_s13, 3 }
   0xd   : > { %751 = vmatpush3.msra.mxu0 %v232_v0  ;;  %846 = vmatpush3.msra.mxu1 %v232_v0  ;;  %s932_s28 = scalar_lea.vmem %s1118_s0, %s696_s23  ;;  %v226_v7 = vld [vmem:[%s1119_s1 + $0x48] sm:$0xff]  ;;  %v225_v8 = vld [vmem:[%s1119_s1 + $0x40] sm:$0xff]  ;;  %v224_v9 = vld [vmem:[%s1119_s1 + $0x38] sm:$0xff]  ;;  %s1004_s4 = scalar_lea.vmem %s1120_s2, %s696_s23 }
   0xe   : > { %752 = vmatprep.subr.mxu0 %v231_v1  ;;  %831 = vmatprep.subr.mxu1 %v231_v1  ;;  %v185_v5 = vld [vmem:[%s932_s28] sm:$0xff]  ;;  %v223_v10 = vld [vmem:[%s1119_s1 + $0x30] sm:$0xff]  ;;  %v222_v11 = vld [vmem:[%s1119_s1 + $0x28] sm:$0xff]  ;;  %s184_s5 = scalar_lea.vmem %s1121_s3, %s699_s18 }
   0xf   : > { %753 = vmatpush3.msra.mxu0 %v231_v1  ;;  %847 = vmatpush3.msra.mxu1 %v231_v1  ;;  %v221_v12 = vld [vmem:[%s1119_s1 + $0x20] sm:$0xff]  ;;  %v220_v13 = vld [vmem:[%s1119_s1 + $0x18] sm:$0xff]  ;;  %v219_v14 = vld [vmem:[%s1119_s1 + $0x10] sm:$0xff] }
  0x10   : > { %754 = vmatprep.subr.mxu0 %v230_v2  ;;  %832 = vmatprep.subr.mxu1 %v230_v2  ;;  %v218_v15 = vld [vmem:[%s1119_s1 + $0x8] sm:$0xff]  ;;  %v217_v16 = vld [vmem:[%s1119_s1] sm:$0xff]  ;;  %v187_v18 = vld [vmem:[%s932_s28 + $0x10] sm:$0xff] }
  0x11   : > { %755 = vmatpush3.msra.mxu0 %v230_v2  ;;  %848 = vmatpush3.msra.mxu1 %v230_v2  ;;  %v186_v17 = vld [vmem:[%s932_s28 + $0x8] sm:$0xff]  ;;  %v201_v19 = vld [vmem:[%s932_s28 + $0x80] sm:$0xff]  ;;  %v203_v21 = vld [vmem:[%s932_s28 + $0x90] sm:$0xff] }
  0x12   : > { %756 = vmatprep.subr.mxu0 %v229_v3  ;;  %833 = vmatprep.subr.mxu1 %v229_v3  ;;  %v202_v20 = vld [vmem:[%s932_s28 + $0x88] sm:$0xff]  ;;  %v188_v22 = vld [vmem:[%s932_s28 + $0x18] sm:$0xff]  ;;  %v189_v23 = vld [vmem:[%s932_s28 + $0x20] sm:$0xff] }
  0x13   : > { %757 = vmatpush3.msra.mxu0 %v229_v3  ;;  %782 = vmatprep.mubr.f32.mxu0 %v185_v5  ;;  %v204_v24 = vld [vmem:[%s932_s28 + $0x98] sm:$0xff]  ;;  %v205_v25 = vld [vmem:[%s932_s28 + $0xa0] sm:$0xff]  ;;  %v190_v26 = vld [vmem:[%s932_s28 + $0x28] sm:$0xff] }
  0x14   : > { %758 = vmatprep.subr.mxu0 %v228_v4  ;;  %849 = vmatpush3.msra.mxu1 %v229_v3  ;;  %v191_v27 = vld [vmem:[%s932_s28 + $0x30] sm:$0xff]  ;;  %v206_v28 = vld [vmem:[%s932_s28 + $0xa8] sm:$0xff]  ;;  %v192_v30 = vld [vmem:[%s932_s28 + $0x38] sm:$0xff] }
  0x15   : > { %759 = vmatpush3.msra.mxu0 %v228_v4  ;;  %834 = vmatprep.subr.mxu1 %v228_v4  ;;  %v207_v29 = vld [vmem:[%s932_s28 + $0xb0] sm:$0xff]  ;;  %v193_v31 = vld [vmem:[%s932_s28 + $0x40] sm:$0xff]  ;;  %v208_v32 = vld [vmem:[%s932_s28 + $0xb8] sm:$0xff] }
  0x16   : > { %760 = vmatprep.subr.mxu0 %v227_v6  ;;  %850 = vmatpush3.msra.mxu1 %v228_v4  ;;  %v209_v33 = vld [vmem:[%s932_s28 + $0xc0] sm:$0xff]  ;;  %v194_v34 = vld [vmem:[%s932_s28 + $0x48] sm:$0xff]  ;;  %v195_v35 = vld [vmem:[%s932_s28 + $0x50] sm:$0xff] }
  0x17   : > { %761 = vmatpush3.msra.mxu0 %v227_v6  ;;  %835 = vmatprep.subr.mxu1 %v227_v6  ;;  %v210_v36 = vld [vmem:[%s932_s28 + $0xc8] sm:$0xff]  ;;  %v211_v37 = vld [vmem:[%s932_s28 + $0xd0] sm:$0xff]  ;;  %v196_v38 = vld [vmem:[%s932_s28 + $0x58] sm:$0xff] }
  0x18   : > { %762 = vmatprep.subr.mxu0 %v226_v7  ;;  %851 = vmatpush3.msra.mxu1 %v227_v6  ;;  %v197_v39 = vld [vmem:[%s932_s28 + $0x60] sm:$0xff]  ;;  %v212_v40 = vld [vmem:[%s932_s28 + $0xd8] sm:$0xff]  ;;  %v198_v42 = vld [vmem:[%s932_s28 + $0x68] sm:$0xff] }
  0x19   : > { %763 = vmatpush3.msra.mxu0 %v226_v7  ;;  %836 = vmatprep.subr.mxu1 %v226_v7  ;;  %v213_v41 = vld [vmem:[%s932_s28 + $0xe0] sm:$0xff]  ;;  %v199_v43 = vld [vmem:[%s932_s28 + $0x70] sm:$0xff]  ;;  %v214_v44 = vld [vmem:[%s932_s28 + $0xe8] sm:$0xff] }
  0x1a   : > { %764 = vmatprep.subr.mxu0 %v225_v8  ;;  %852 = vmatpush3.msra.mxu1 %v226_v7  ;;  %v215_v45 = vld [vmem:[%s932_s28 + $0xf0] sm:$0xff]  ;;  %v200_v46 = vld [vmem:[%s932_s28 + $0x78] sm:$0xff] }
  0x1b   : > { %765 = vmatpush3.msra.mxu0 %v225_v8  ;;  %837 = vmatprep.subr.mxu1 %v225_v8  ;;  %v216_v47 = vld [vmem:[%s932_s28 + $0xf8] sm:$0xff] }
  0x1c   : > { %766 = vmatprep.subr.mxu0 %v224_v9  ;;  %853 = vmatpush3.msra.mxu1 %v225_v8 }
  0x1d   : > { %767 = vmatpush3.msra.mxu0 %v224_v9  ;;  %838 = vmatprep.subr.mxu1 %v224_v9 }
  0x1e   : > { %768 = vmatprep.subr.mxu0 %v223_v10  ;;  %854 = vmatpush3.msra.mxu1 %v224_v9 }
  0x1f   : > { %769 = vmatpush3.msra.mxu0 %v223_v10  ;;  %839 = vmatprep.subr.mxu1 %v223_v10 }
  0x20   : > { %770 = vmatprep.subr.mxu0 %v222_v11  ;;  %855 = vmatpush3.msra.mxu1 %v223_v10 }
  0x21   : > { %771 = vmatpush3.msra.mxu0 %v222_v11  ;;  %840 = vmatprep.subr.mxu1 %v222_v11 }
  0x22   : > { %772 = vmatprep.subr.mxu0 %v221_v12  ;;  %856 = vmatpush3.msra.mxu1 %v222_v11 }
  0x23   : > { %773 = vmatpush3.msra.mxu0 %v221_v12  ;;  %841 = vmatprep.subr.mxu1 %v221_v12 }
  0x24   : > { %774 = vmatprep.subr.mxu0 %v220_v13  ;;  %857 = vmatpush3.msra.mxu1 %v221_v12 }
  0x25   : > { %775 = vmatpush3.msra.mxu0 %v220_v13  ;;  %842 = vmatprep.subr.mxu1 %v220_v13 }
  0x26   : > { %776 = vmatprep.subr.mxu0 %v219_v14  ;;  %858 = vmatpush3.msra.mxu1 %v220_v13 }
  0x27   : > { %777 = vmatpush3.msra.mxu0 %v219_v14  ;;  %843 = vmatprep.subr.mxu1 %v219_v14 }
  0x28   : > { %778 = vmatprep.subr.mxu0 %v218_v15  ;;  %859 = vmatpush3.msra.mxu1 %v219_v14 }
  0x29   : > { %779 = vmatpush3.msra.mxu0 %v218_v15  ;;  %844 = vmatprep.subr.mxu1 %v218_v15 }
  0x2a   : > { %780 = vmatprep.subr.mxu0 %v217_v16  ;;  %860 = vmatpush3.msra.mxu1 %v218_v15 }
  0x2b   : > { %781 = vmatpush3.msra.mxu0 %v217_v16  ;;  %845 = vmatprep.subr.mxu1 %v217_v16 }
  0x2c   : > { %783 = vmatmul.mubr.f32.vlgmr.msra.gmra.mxu0 %v186_v17  ;;  %861 = vmatpush3.msra.mxu1 %v217_v16 }
  0x2d   : > { %785 = vmatprep.mubr.f32.mxu0 %v187_v18  ;;  %806 = vmatprep.mubr.f32.mxu1 %v201_v19 }
  0x2e   : > { %807 = vmatmul.mubr.f32.vlgmr.msra.gmra.mxu1 %v202_v20 }
  0x2f   : > { %809 = vmatprep.mubr.f32.mxu1 %v203_v21 }
  0x30   : > { %786 = vmatmul.mubr.f32.gmra.mxu0 %v188_v22 }
  0x31   : > { %788 = vmatprep.mubr.f32.mxu0 %v189_v23 }
  0x32   : > { %810 = vmatmul.mubr.f32.gmra.mxu1 %v204_v24 }
  0x33   : > { %812 = vmatprep.mubr.f32.mxu1 %v205_v25 }
  0x34   : > { %789 = vmatmul.mubr.f32.gmra.mxu0 %v190_v26 }
  0x35   : > { %791 = vmatprep.mubr.f32.mxu0 %v191_v27 }
  0x36   : > { %813 = vmatmul.mubr.f32.gmra.mxu1 %v206_v28 }
  0x37   : > { %815 = vmatprep.mubr.f32.mxu1 %v207_v29 }
  0x38   : > { %792 = vmatmul.mubr.f32.gmra.mxu0 %v192_v30 }
  0x39   : > { %794 = vmatprep.mubr.f32.mxu0 %v193_v31 }
  0x3a   : > { %816 = vmatmul.mubr.f32.gmra.mxu1 %v208_v32 }
  0x3b   : > { %818 = vmatprep.mubr.f32.mxu1 %v209_v33 }
  0x3c   : > { %795 = vmatmul.mubr.f32.gmra.mxu0 %v194_v34 }
  0x3d   : > { %797 = vmatprep.mubr.f32.mxu0 %v195_v35 }
  0x3e   : > { %819 = vmatmul.mubr.f32.gmra.mxu1 %v210_v36 }
  0x3f   : > { %821 = vmatprep.mubr.f32.mxu1 %v211_v37 }
  0x40   : > { %798 = vmatmul.mubr.f32.gmra.mxu0 %v196_v38 }
  0x41   : > { %800 = vmatprep.mubr.f32.mxu0 %v197_v39 }
  0x42   : > { %822 = vmatmul.mubr.f32.gmra.mxu1 %v212_v40 }
  0x43   : > { %824 = vmatprep.mubr.f32.mxu1 %v213_v41 }
  0x44   : > { %801 = vmatmul.mubr.f32.gmra.mxu0 %v198_v42 }
  0x45   : > { %803 = vmatprep.mubr.f32.mxu0 %v199_v43 }
  0x46   : > { %825 = vmatmul.mubr.f32.gmra.mxu1 %v214_v44 }
  0x47   : > { %827 = vmatprep.mubr.f32.mxu1 %v215_v45 }
  0x48   : > { %804 = vmatmul.mubr.f32.gmra.mxu0 %v200_v46 }
  0x4a   : > { %828 = vmatmul.mubr.f32.gmra.mxu1 %v216_v47 }
  0xec   : > { %v784_v48 = vpop.f32.mrf.mxu0 }
  0xed   : > { %459 = vst [vmem:[%s1004_s4 + $0x8] sm:$0xff] %v784_v48  ;;  %v528_v54 = vmul.f32 %v784_v48, %v784_v48 }
  0xee   : > { %v299_v49 = vpop.f32.mrf.mxu0  ;;  %v1007_v50 = vpop.f32.mrf.mxu1 }
  0xef   : > { %458 = vst [vmem:[%s1004_s4] sm:$0xff] %v299_v49  ;;  %v527_v51 = vmul.f32 %v299_v49, %v299_v49  ;;  %475 = vst [vmem:[%s1004_s4 + $0x88] sm:$0xff] %v1007_v50  ;;  %v490_v55 = vadd.f32 %v784_v48, %v299_v49 }
  0xf0   : > { %v787_v52 = vpop.f32.mrf.mxu0  ;;  %v1012_v53 = vpop.f32.mrf.mxu1 }
  0xf1   : > { %461 = vst [vmem:[%s1004_s4 + $0x18] sm:$0xff] %v787_v52  ;;  %474 = vst [vmem:[%s1004_s4 + $0x80] sm:$0xff] %v1012_v53  ;;  %v559_v58 = vadd.f32 %v528_v54, %v527_v51  ;;  %v530_v63 = vmul.f32 %v787_v52, %v787_v52 }
  0xf2   : > { %v309_v56 = vpop.f32.mrf.mxu0  ;;  %v1017_v57 = vpop.f32.mrf.mxu1 }
  0xf3   : > { %460 = vst [vmem:[%s1004_s4 + $0x10] sm:$0xff] %v309_v56  ;;  %v491_v59 = vadd.f32 %v490_v55, %v309_v56  ;;  %v529_v60 = vmul.f32 %v309_v56, %v309_v56  ;;  %477 = vst [vmem:[%s1004_s4 + $0x98] sm:$0xff] %v1017_v57 }
  0xf4   : > { %v790_v61 = vpop.f32.mrf.mxu0  ;;  %v1022_v62 = vpop.f32.mrf.mxu1 }
  0xf5   : > { %v560_v0 = vadd.f32 %v559_v58, %v529_v60  ;;  %463 = vst [vmem:[%s1004_s4 + $0x28] sm:$0xff] %v790_v61  ;;  %v492_v1 = vadd.f32 %v787_v52, %v491_v59  ;;  %476 = vst [vmem:[%s1004_s4 + $0x90] sm:$0xff] %v1022_v62  ;;  %v532_v9 = vmul.f32 %v790_v61, %v790_v61 }
  0xf6   : > { %v319_v2 = vpop.f32.mrf.mxu0  ;;  %v1027_v3 = vpop.f32.mrf.mxu1 }
  0xf7   : > { %462 = vst [vmem:[%s1004_s4 + $0x20] sm:$0xff] %v319_v2  ;;  %v493_v4 = vadd.f32 %v492_v1, %v319_v2  ;;  %v531_v5 = vmul.f32 %v319_v2, %v319_v2  ;;  %v561_v6 = vadd.f32 %v560_v0, %v530_v63  ;;  %479 = vst [vmem:[%s1004_s4 + $0xa8] sm:$0xff] %v1027_v3 }
  0xf8   : > { %v793_v7 = vpop.f32.mrf.mxu0  ;;  %v1032_v8 = vpop.f32.mrf.mxu1 }
  0xf9   : > { %v562_v10 = vadd.f32 %v561_v6, %v531_v5  ;;  %465 = vst [vmem:[%s1004_s4 + $0x38] sm:$0xff] %v793_v7  ;;  %v494_v11 = vadd.f32 %v790_v61, %v493_v4  ;;  %478 = vst [vmem:[%s1004_s4 + $0xa0] sm:$0xff] %v1032_v8  ;;  %v534_v19 = vmul.f32 %v793_v7, %v793_v7 }
  0xfa   : > { %v329_v12 = vpop.f32.mrf.mxu0  ;;  %v1037_v13 = vpop.f32.mrf.mxu1  ;;  %v543_v4 = vmul.f32 %v1012_v53, %v1012_v53  ;;  %v544_v5 = vmul.f32 %v1007_v50, %v1007_v50 }
  0xfb   : > { %464 = vst [vmem:[%s1004_s4 + $0x30] sm:$0xff] %v329_v12  ;;  %v495_v14 = vadd.f32 %v494_v11, %v329_v12  ;;  %v533_v15 = vmul.f32 %v329_v12, %v329_v12  ;;  %v563_v16 = vadd.f32 %v562_v10, %v532_v9  ;;  %481 = vst [vmem:[%s1004_s4 + $0xb8] sm:$0xff] %v1037_v13 }
  0xfc   : > { %v796_v17 = vpop.f32.mrf.mxu0  ;;  %v1042_v18 = vpop.f32.mrf.mxu1  ;;  %v545_v10 = vmul.f32 %v1022_v62, %v1022_v62  ;;  %v546_v12 = vmul.f32 %v1017_v57, %v1017_v57 }
  0xfd   : > { %v564_v20 = vadd.f32 %v563_v16, %v533_v15  ;;  %467 = vst [vmem:[%s1004_s4 + $0x48] sm:$0xff] %v796_v17  ;;  %v496_v21 = vadd.f32 %v793_v7, %v495_v14  ;;  %480 = vst [vmem:[%s1004_s4 + $0xb0] sm:$0xff] %v1042_v18  ;;  %v536_v29 = vmul.f32 %v796_v17, %v796_v17 }
  0xfe   : > { %v339_v22 = vpop.f32.mrf.mxu0  ;;  %v1047_v23 = vpop.f32.mrf.mxu1  ;;  %v547_v16 = vmul.f32 %v1032_v8, %v1032_v8 }
  0xff   : > { %466 = vst [vmem:[%s1004_s4 + $0x40] sm:$0xff] %v339_v22  ;;  %v497_v24 = vadd.f32 %v496_v21, %v339_v22  ;;  %v535_v25 = vmul.f32 %v339_v22, %v339_v22  ;;  %v565_v26 = vadd.f32 %v564_v20, %v534_v19  ;;  %483 = vst [vmem:[%s1004_s4 + $0xc8] sm:$0xff] %v1047_v23 }
 0x100   : > { %v799_v27 = vpop.f32.mrf.mxu0  ;;  %v1052_v28 = vpop.f32.mrf.mxu1  ;;  %v549_v21 = vmul.f32 %v1042_v18, %v1042_v18 }
 0x101   : > { %v566_v30 = vadd.f32 %v565_v26, %v535_v25  ;;  %469 = vst [vmem:[%s1004_s4 + $0x58] sm:$0xff] %v799_v27  ;;  %v498_v31 = vadd.f32 %v796_v17, %v497_v24  ;;  %482 = vst [vmem:[%s1004_s4 + $0xc0] sm:$0xff] %v1052_v28  ;;  %v538_v39 = vmul.f32 %v799_v27, %v799_v27 }
 0x102   : > { %v349_v32 = vpop.f32.mrf.mxu0  ;;  %v1057_v33 = vpop.f32.mrf.mxu1  ;;  %v551_v26 = vmul.f32 %v1052_v28, %v1052_v28 }
 0x103   : > { %468 = vst [vmem:[%s1004_s4 + $0x50] sm:$0xff] %v349_v32  ;;  %v499_v34 = vadd.f32 %v498_v31, %v349_v32  ;;  %v537_v35 = vmul.f32 %v349_v32, %v349_v32  ;;  %v567_v36 = vadd.f32 %v566_v30, %v536_v29  ;;  %485 = vst [vmem:[%s1004_s4 + $0xd8] sm:$0xff] %v1057_v33 }
 0x104   : > { %v802_v37 = vpop.f32.mrf.mxu0  ;;  %v429_v38 = vpop.f32.mrf.mxu1 }
 0x105   : > { %v568_v40 = vadd.f32 %v567_v36, %v537_v35  ;;  %471 = vst [vmem:[%s1004_s4 + $0x68] sm:$0xff] %v802_v37  ;;  %v500_v41 = vadd.f32 %v799_v27, %v499_v34  ;;  %484 = vst [vmem:[%s1004_s4 + $0xd0] sm:$0xff] %v429_v38  ;;  %v540_v49 = vmul.f32 %v802_v37, %v802_v37 }
 0x106   : > { %v359_v42 = vpop.f32.mrf.mxu0  ;;  %v1064_v43 = vpop.f32.mrf.mxu1  ;;  %v553_v31 = vmul.f32 %v429_v38, %v429_v38  ;;  %v554_v34 = vmul.f32 %v1057_v33, %v1057_v33 }
 0x107   : > { %470 = vst [vmem:[%s1004_s4 + $0x60] sm:$0xff] %v359_v42  ;;  %v501_v44 = vadd.f32 %v500_v41, %v359_v42  ;;  %v539_v45 = vmul.f32 %v359_v42, %v359_v42  ;;  %v569_v46 = vadd.f32 %v568_v40, %v538_v39  ;;  %487 = vst [vmem:[%s1004_s4 + $0xe8] sm:$0xff] %v1064_v43 }
 0x108   : > { %v805_v47 = vpop.f32.mrf.mxu0  ;;  %v439_v48 = vpop.f32.mrf.mxu1  ;;  %v556_v39 = vmul.f32 %v1064_v43, %v1064_v43 }
 0x109   : > { %v570_v51 = vadd.f32 %v569_v46, %v539_v45  ;;  %473 = vst [vmem:[%s1004_s4 + $0x78] sm:$0xff] %v805_v47  ;;  %v502_v52 = vadd.f32 %v802_v37, %v501_v44  ;;  %486 = vst [vmem:[%s1004_s4 + $0xe0] sm:$0xff] %v439_v48  ;;  %v542_v61 = vmul.f32 %v805_v47, %v805_v47 }
 0x10a   : > { %v369_v54 = vpop.f32.mrf.mxu0  ;;  %v829_v55 = vpop.f32.mrf.mxu1  ;;  %v555_v37 = vmul.f32 %v439_v48, %v439_v48 }
 0x10b   : > { %472 = vst [vmem:[%s1004_s4 + $0x70] sm:$0xff] %v369_v54  ;;  %v503_v56 = vadd.f32 %v502_v52, %v369_v54  ;;  %v541_v58 = vmul.f32 %v369_v54, %v369_v54  ;;  %v571_v59 = vadd.f32 %v570_v51, %v540_v49  ;;  %489 = vst [vmem:[%s1004_s4 + $0xf8] sm:$0xff] %v829_v55 }
 0x10c   : > { %v449_v60 = vpop.f32.mrf.mxu1  ;;  %v558_v44 = vmul.f32 %v829_v55, %v829_v55 }
 0x10d   : > { %v504_v63 = vadd.f32 %v805_v47, %v503_v56  ;;  %v572_v0 = vadd.f32 %v571_v59, %v541_v58  ;;  %488 = vst [vmem:[%s1004_s4 + $0xf0] sm:$0xff] %v449_v60 }
 0x10f   : > { %v573_v1 = vadd.f32 %v572_v0, %v542_v61  ;;  %v505_v2 = vadd.f32 %v504_v63, %v1012_v53 }
 0x111   : > { %v574_v6 = vadd.f32 %v573_v1, %v543_v4  ;;  %v506_v7 = vadd.f32 %v1007_v50, %v505_v2  ;;  %v548_v50 = vmul.f32 %v1027_v3, %v1027_v3 }
 0x113   : > { %v507_v9 = vadd.f32 %v506_v7, %v1022_v62  ;;  %v575_v11 = vadd.f32 %v574_v6, %v544_v5 }
 0x115   : > { %v576_v14 = vadd.f32 %v575_v11, %v545_v10  ;;  %v508_v15 = vadd.f32 %v1017_v57, %v507_v9  ;;  %v550_v57 = vmul.f32 %v1037_v13, %v1037_v13 }
 0x117   : > { %v509_v53 = vadd.f32 %v508_v15, %v1032_v8  ;;  %v577_v17 = vadd.f32 %v576_v14, %v546_v12 }
 0x119   : > { %v578_v19 = vadd.f32 %v577_v17, %v547_v16  ;;  %v510_v20 = vadd.f32 %v1027_v3, %v509_v53  ;;  %v552_v3 = vmul.f32 %v1047_v23, %v1047_v23 }
 0x11b   : > { %v511_v62 = vadd.f32 %v510_v20, %v1042_v18  ;;  %v579_v22 = vadd.f32 %v578_v19, %v548_v50 }
 0x11d   : > { %v580_v24 = vadd.f32 %v579_v22, %v549_v21  ;;  %v512_v25 = vadd.f32 %v1037_v13, %v511_v62 }
 0x11f   : > { %v513_v8 = vadd.f32 %v512_v25, %v1052_v28  ;;  %v581_v27 = vadd.f32 %v580_v24, %v550_v57 }
 0x121   : > { %v582_v29 = vadd.f32 %v581_v27, %v551_v26  ;;  %v514_v30 = vadd.f32 %v1047_v23, %v513_v8 }
 0x123   : > { %v515_v18 = vadd.f32 %v514_v30, %v429_v38  ;;  %v583_v32 = vadd.f32 %v582_v29, %v552_v3  ;;  %v557_v38 = vmul.f32 %v449_v60, %v449_v60 }
 0x125   : > { %v584_v35 = vadd.f32 %v583_v32, %v553_v31  ;;  %v516_v13 = vadd.f32 %v1057_v33, %v515_v18 }
 0x127   : > { %v517_v36 = vadd.f32 %v516_v13, %v439_v48  ;;  %v585_v28 = vadd.f32 %v584_v35, %v554_v34  ;;  %v596_v48 = vlaneseq }
 0x129   : > { %v586_v40 = vadd.f32 %v585_v28, %v555_v37  ;;  %v518_v23 = vadd.f32 %v1064_v43, %v517_v36  ;;  %v597_v59 = vshrl.u32 %v596_v48, 7 }
 0x12b   : > { %v519_v41 = vadd.f32 %v518_v23, %v449_v60  ;;  %v587_v42 = vadd.f32 %v586_v40, %v556_v39  ;;  %vm599_vm0 = vcmp.eq.s32.totalorder %v597_v59, 1  ;;  %vm598_vm1 = vcmp.eq.s32.totalorder %v597_v59, 0 }
 0x12d   : > { %v520_v45 = vadd.f32 %v829_v55, %v519_v41  ;;  %v588_v46 = vadd.f32 %v587_v42, %v557_v38 }
 0x12f   : > { %v521_v47 = vrot.slane %v520_v45, 4  ;;  %v589_v49 = vadd.f32 %v588_v46, %v558_v44 }
 0x131   : > { %v522_v33 = vadd.f32 %v521_v47, %v520_v45  ;;  %v590_v51 = vrot.slane %v589_v49, 4 }
 0x133   : > { %v523_v52 = vrot.slane %v522_v33, 2  ;;  %v591_v54 = vadd.f32 %v590_v51, %v589_v49 }
 0x135   : > { %v524_v56 = vadd.f32 %v523_v52, %v522_v33  ;;  %v592_v58 = vrot.slane %v591_v54, 2 }
 0x137   : > { %v593_v61 = vadd.f32 %v592_v58, %v591_v54  ;;  %v525_v43 = vrot.slane %v524_v56, 1 }
 0x139   : > { %v594_v60 = vrot.slane %v593_v61, 1  ;;  %v526_v55 = vadd.f32 %v525_v43, %v524_v56 }
 0x13b   : > { %v595_v63 = vadd.f32 %v594_v60, %v593_v61 }
 0x13d   : > { %v600_v0 = vsel %vm599_vm0, %v595_v63, 0.0 }
 0x13e   : > { %v601_v1 = vsel %vm598_vm1, %v526_v55, %v600_v0 }
 0x13f   : > { %602 = vst [vmem:[%s184_s5] sm:$0xff] %v601_v1 }
 0x140 PF: > { %s14_s12 = sadd.s32 1, %s876_s12  }
 0x141   : > { %p11_p5 = scmp.ge.s32.totalorder %s14_s12, 4  }
 0x143   :  { %13 = sbr.rel (!%p11_p5) target bundleno = 1 (0x1), region = 70 }

</bundles_post_ra>
